<compile_context>
chip_gen: v6e
topology: v6e:2x2x1
jax: 0.10.0
libtpu: 0.0.40
codegen_flags: <defaults>
</compile_context>

<pallas_src>
import math

import jax
import jax.numpy as jnp
from jax import lax
from jax.experimental import pallas as pl
from jax.experimental.pallas import tpu as pltpu

_LANE = 128
_SMALL_MAX_ROWS = 512                                  # <= 512x128 f32 = 256 KiB: one grid step
_BLOCK_ROW_CANDIDATES = (8192, 4096, 2048, 1024, 512)  # 4 MiB .. 256 KiB f32 tiles (no tiny tiles)
_TRANSCENDENTAL_TYPES = ('vanilla', 'wgan_softplus')   # 2 EUP ops (exp + log1p) per element


def _make_elem_fn(gan_type, target_is_real, is_disc,
                  real_label_val, fake_label_val, loss_weight):
    """Return (elementwise fn, final scale) so that
       loss == mean(fn(x)) * scale, matching the PyTorch module's forward."""
    out_scale = 1.0 if is_disc else float(loss_weight)

    if gan_type == 'vanilla':
        t = float(real_label_val if target_is_real else fake_label_val)
        # BCEWithLogitsLoss, stable form: max(x,0) - x*t + log(1+exp(-|x|))
        # (on v7x the exp/log1p pair could optionally run in bf16 on the EUP;
        #  kept in f32 here for chip-independent numerics.)
        fn = lambda x: jnp.maximum(x, 0.0) - x * t + jnp.log1p(jnp.exp(-jnp.abs(x)))
    elif gan_type == 'lsgan':
        t = float(real_label_val if target_is_real else fake_label_val)
        fn = lambda x: (x - t) ** 2
    elif gan_type == 'wgan':
        sign = -1.0 if target_is_real else 1.0
        fn = lambda x: sign * x
    elif gan_type == 'wgan_softplus':
        sign = -1.0 if target_is_real else 1.0
        # softplus(sign*x), stable form (|sign*x| == |x| since sign is +/-1)
        fn = lambda x: jnp.maximum(sign * x, 0.0) + jnp.log1p(jnp.exp(-jnp.abs(x)))
    elif gan_type == 'hinge':
        if is_disc:
            sign = -1.0 if target_is_real else 1.0
            fn = lambda x: jnp.maximum(1.0 + sign * x, 0.0)   # ReLU(1 +/- x)
        else:
            fn = lambda x: -x
    elif gan_type == 'standard':
        if is_disc:
            sign = -1.0 if target_is_real else 1.0
            fn = lambda x: sign * x
        else:
            fn = lambda x: -x
    else:
        raise NotImplementedError(f'GAN type {gan_type} is not implemented.')
    return fn, out_scale


def _tensorcore_parallelism():
    """Best-effort TensorCores addressable by one pallas_call (megacore split).
    v4 / v5p / v7x expose 2; v5e / v6e expose 1.  Falls back to 1 (safe)."""
    try:
        kind = jax.devices()[0].device_kind.lower()
    except Exception:
        return 1
    if any(tag in kind for tag in ("v4", "v5p", "v7")):
        return 2
    return 1


def _make_single_block_kernel(elem_fn, final_scale):
    """One grid step over the whole slab -> fully-finalized scalar in SMEM."""
    def kernel(x_ref, out_ref):
        x = x_ref[...].astype(jnp.float32)
        out_ref[0, 0] = jnp.sum(elem_fn(x)) * jnp.float32(final_scale)
    return kernel


def _make_streaming_kernel(elem_fn, block_rows, blocks_per_outer,
                           rows_total, lane_rem, need_mask,
                           final_scale, scalar_out):
    """Per inner step: elementwise transform + VALU-only fold of a big
    (block_rows, 128) tile into a carried (8, 128) VMEM accumulator.
    Init at inner==0, finalize at inner==last.  Tail raggedness is masked
    in-kernel (exact), so no padding / pad-correction is needed."""
    def kernel(x_ref, out_ref, acc_ref):
        o = pl.program_id(0)
        i = pl.program_id(1)

        @pl.when(i == 0)
        def _init():
            acc_ref[...] = jnp.zeros_like(acc_ref)

        vals = elem_fn(x_ref[...].astype(jnp.float32))

        if need_mask:
            # Global row / element validity; invalid positions (tail rows of
            # the last real block, duplicated clamped blocks, lane padding)
            # are selected to exactly 0.0 before the fold.
            b = o * blocks_per_outer + i
            row_g = b * block_rows + lax.broadcasted_iota(
                jnp.int32, (block_rows, _LANE), 0)
            if lane_rem == 0:
                valid = row_g < rows_total
            else:
                lane = lax.broadcasted_iota(jnp.int32, (block_rows, _LANE), 1)
                valid = (row_g < rows_total - 1) | (
                    (row_g == rows_total - 1) & (lane < lane_rem))
            vals = jnp.where(valid, vals, jnp.float32(0.0))

        # Leading-axis reduce keeps the (8, 128) minor tiles intact: pure
        # vector adds across vregs, no per-step XLU full reduce.
        acc_ref[...] += vals.reshape(block_rows // 8, 8, _LANE).sum(axis=0)

        @pl.when(i == blocks_per_outer - 1)
        def _finalize():
            if scalar_out:
                # Single-TC chips: finish entirely in-kernel (one XLU reduce
                # + scale) -> no second XLA launch, no partials round-trip.
                out_ref[0, 0] = jnp.sum(acc_ref[...]) * jnp.float32(final_scale)
            else:
                # Multi-TC chips: each core writes its own (8,128) partial.
                out_ref[...] = acc_ref[...]
    return kernel


def gan_loss_pallas(x, gan_type, target_is_real, is_disc=False,
                    real_label_val=1.0, fake_label_val=0.0, loss_weight=1.0):
    """Pallas implementation of GANLoss.forward(input, target_is_real, is_disc)."""
    elem_fn, scale = _make_elem_fn(gan_type, target_is_real, is_disc,
                                   real_label_val, fake_label_val, loss_weight)

    total = int(math.prod(x.shape))
    final_scale = scale / total
    rows_total = -(-total // _LANE)
    lane_rem = total % _LANE

    # ---------------- small path: one grid step, scalar finalized in-kernel --
    if rows_total <= _SMALL_MAX_ROWS:
        if lane_rem == 0:
            x2d = x.reshape(rows_total, _LANE)     # metadata-only reshape
        else:
            x2d = x.reshape(1, total)              # full-extent block: no pad, no copy
        out = pl.pallas_call(
            _make_single_block_kernel(elem_fn, final_scale),
            out_shape=jax.ShapeDtypeStruct((1, 1), jnp.float32),
            grid=(1,),
            in_specs=[pl.BlockSpec(x2d.shape, lambda i: (0, 0))],
            out_specs=pl.BlockSpec(memory_space=pltpu.SMEM),
        )(x2d)
        return out[0, 0]

    # ---------------- streaming path: one fused pallas_call ------------------
    if lane_rem == 0:
        x2d = x.reshape(rows_total, _LANE)         # metadata-only reshape
    else:
        # TODO(synk): the rare lane-ragged *large* input still pays one pad
        # copy so the (rows,128) view exists; the in-kernel element mask keeps
        # the result exact regardless of the padded values.
        x2d = jnp.pad(x.reshape(-1),
                      (0, rows_total * _LANE - total)).reshape(rows_total, _LANE)

    n_outer = 2 if (_tensorcore_parallelism() >= 2 and
                    rows_total >= 4 * _BLOCK_ROW_CANDIDATES[-1]) else 1
    rows_per_track = -(-rows_total // n_outer)
    block_rows = next((c for c in _BLOCK_ROW_CANDIDATES if 2 * c <= rows_per_track),
                      _BLOCK_ROW_CANDIDATES[-1])
    n_blocks_total = -(-rows_total // block_rows)
    blocks_per_outer = -(-n_blocks_total // n_outer)
    scalar_out = (n_outer == 1)

    need_clamp = n_outer * blocks_per_outer > n_blocks_total
    need_mask = (n_outer * blocks_per_outer * block_rows != rows_total) or (lane_rem != 0)

    def in_index_map(o, i):
        b = o * blocks_per_outer + i
        if need_clamp:
            # Dummy trailing blocks on an uneven 2-way split re-read the last
            # valid block; the in-kernel mask zeroes their contribution.
            b = jnp.minimum(b, n_blocks_total - 1)
        return (b, 0)

    kernel = _make_streaming_kernel(elem_fn, block_rows, blocks_per_outer,
                                    rows_total, lane_rem, need_mask,
                                    final_scale, scalar_out)

    n_trans = 2 * total if gan_type in _TRANSCENDENTAL_TYPES else 0
    cost = pl.CostEstimate(flops=6 * total, transcendentals=n_trans,
                           bytes_accessed=int(x2d.size) * x2d.dtype.itemsize)
    # (pipeline_mode=pl.Buffered(3) on the input spec is a possible follow-up
    #  if a trace still shows exposed DMA on v7x; structural changes first.)

    if scalar_out:
        out = pl.pallas_call(
            kernel,
            out_shape=jax.ShapeDtypeStruct((1, 1), jnp.float32),
            grid=(n_outer, blocks_per_outer),
            in_specs=[pl.BlockSpec((block_rows, _LANE), in_index_map)],
            out_specs=pl.BlockSpec(memory_space=pltpu.SMEM),
            scratch_shapes=[pltpu.VMEM((8, _LANE), jnp.float32)],
            compiler_params=pltpu.CompilerParams(
                dimension_semantics=("arbitrary", "arbitrary")),
            cost_estimate=cost,
        )(x2d)
        return out[0, 0]

    partials = pl.pallas_call(
        kernel,
        out_shape=jax.ShapeDtypeStruct((n_outer * 8, _LANE), jnp.float32),
        grid=(n_outer, blocks_per_outer),
        in_specs=[pl.BlockSpec((block_rows, _LANE), in_index_map)],
        out_specs=pl.BlockSpec((8, _LANE), lambda o, i: (o, 0)),
        scratch_shapes=[pltpu.VMEM((8, _LANE), jnp.float32)],
        compiler_params=pltpu.CompilerParams(
            dimension_semantics=("parallel", "arbitrary")),
        cost_estimate=cost,
    )(x2d)
    # Constant-size (2x8x128) combine; only reached on multi-TC chips.
    return jnp.sum(partials) * jnp.float32(final_scale)


def gan_loss_ref(x, gan_type, target_is_real, is_disc=False,
                 real_label_val=1.0, fake_label_val=0.0, loss_weight=1.0):
    """Pure-JAX reference mirroring the PyTorch semantics."""
    elem_fn, scale = _make_elem_fn(gan_type, target_is_real, is_disc,
                                   real_label_val, fake_label_val, loss_weight)
    return jnp.mean(elem_fn(x.astype(jnp.float32))) * scale


def _check(name, x, cases, rtol, atol):
    for gan_type, target_is_real, is_disc in cases:
        got = gan_loss_pallas(x, gan_type, target_is_real, is_disc,
                              real_label_val=1.0, fake_label_val=0.0,
                              loss_weight=0.5)
        want = gan_loss_ref(x, gan_type, target_is_real, is_disc,
                            real_label_val=1.0, fake_label_val=0.0,
                            loss_weight=0.5)
        got = jax.block_until_ready(got)
        if not jnp.allclose(got, want, rtol=rtol, atol=atol):
            raise AssertionError(
                f"[{name}] mismatch for {gan_type}, real={target_is_real}, "
                f"disc={is_disc}: {got} vs {want}")


if __name__ == "__main__":
    # The module's own NCHW prediction: [2, 4, 16, 16] -> 2048 = 16x128 (small path).
    x_small = jax.random.normal(jax.random.PRNGKey(0), (2, 4, 16, 16), dtype=jnp.float32)
    # Streaming accumulator path: 1,048,576 elems = 8192 rows, multi-block reduce.
    x_stream = jax.random.normal(jax.random.PRNGKey(1), (8, 16, 64, 128), dtype=jnp.float32)
    # Masked-tail path: 76,800 elems = 600 rows (not a multiple of block_rows).
    x_tail = jax.random.normal(jax.random.PRNGKey(2), (3, 5, 40, 128), dtype=jnp.float32)
    # Lane-ragged small path: 210 elems (not a multiple of 128), no pad.
    x_narrow = jax.random.normal(jax.random.PRNGKey(3), (2, 3, 5, 7), dtype=jnp.float32)

    all_cases = [(g, r, d)
                 for g in ('vanilla', 'lsgan', 'wgan', 'wgan_softplus', 'hinge', 'standard')
                 for r in (True, False) for d in (True, False)]
    big_cases = [('vanilla', True, False), ('lsgan', False, True),
                 ('wgan_softplus', True, True), ('hinge', True, True),
                 ('standard', False, False)]

    _check("small", x_small, all_cases, 1e-5, 1e-5)
    _check("stream", x_stream, big_cases, 1e-4, 1e-6)
    _check("tail", x_tail, big_cases, 1e-4, 1e-6)
    _check("narrow", x_narrow, big_cases, 1e-5, 1e-5)

    print("KERNEL_OK")
</pallas_src>

<mosaic_0001>
module attributes {stable_mosaic.version = 11 : i64} {
  func.func @kernel(%arg0: i32, %arg1: memref<16x128xf32, #tpu.memory_space<vmem>>, %arg2: memref<1x1xf32, #tpu.memory_space<smem>>) attributes {dimension_semantics = [#tpu.dimension_semantics<arbitrary>], iteration_bounds = array<i64: 1>, scalar_prefetch = 0 : i64, scratch_operands = 0 : i64, tpu.core_type = #tpu.core_type<tc>, window_params = [{pipeline_mode = #tpu.pipeline_mode<synchronous>, transform_indices = @transform_0, window_bounds = array<i64: 16, 128>}, {transform_indices = @transform_1, window_bounds = array<i64: 1, 1>}]} {
    %c0 = arith.constant 0 : index
    %c0_0 = arith.constant 0 : index
    %0 = vector.load %arg1[%c0, %c0_0] : memref<16x128xf32, #tpu.memory_space<vmem>>, vector<16x128xf32>
    %cst = arith.constant 0.000000e+00 : f32
    %1 = vector.broadcast %cst : f32 to vector<16x128xf32>
    %2 = arith.maximumf %0, %1 : vector<16x128xf32>
    %cst_1 = arith.constant 1.000000e+00 : f32
    %3 = vector.broadcast %cst_1 : f32 to vector<16x128xf32>
    %4 = arith.mulf %0, %3 : vector<16x128xf32>
    %5 = arith.subf %2, %4 : vector<16x128xf32>
    %6 = math.absf %0 : vector<16x128xf32>
    %cst_2 = arith.constant 0.000000e+00 : f32
    %7 = vector.broadcast %cst_2 : f32 to vector<16x128xf32>
    %8 = arith.subf %7, %6 : vector<16x128xf32>
    %9 = math.exp %8 : vector<16x128xf32>
    %10 = math.log1p %9 : vector<16x128xf32>
    %11 = arith.addf %5, %10 : vector<16x128xf32>
    %12 = vector.shape_cast %11 : vector<16x128xf32> to vector<1x16x128xf32>
    %cst_3 = arith.constant dense<0.000000e+00> : vector<1xf32>
    %13 = vector.multi_reduction <add>, %12, %cst_3 [1, 2] : vector<1x16x128xf32> to vector<1xf32>
    %14 = vector.shape_cast %13 : vector<1xf32> to vector<1x1x1xf32>
    %15 = vector.extract %14[0, 0, 0] : f32 from vector<1x1x1xf32>
    %cst_4 = arith.constant 4.8828125E-4 : f32
    %16 = arith.mulf %15, %cst_4 : f32
    %c0_5 = arith.constant 0 : index
    %c0_6 = arith.constant 0 : index
    %17 = memref.load %arg2[%c0_5, %c0_6] : memref<1x1xf32, #tpu.memory_space<smem>>
    memref.store %16, %arg2[%c0_5, %c0_6] : memref<1x1xf32, #tpu.memory_space<smem>>
    return
  }
  func.func @transform_0(%arg0: i32) -> (i32, i32) {
    %c0_i32 = arith.constant 0 : i32
    %c0_i32_0 = arith.constant 0 : i32
    %c0_i32_1 = arith.constant 0 : i32
    return %c0_i32, %c0_i32_0 : i32, i32
  }
  func.func @transform_1(%arg0: i32) -> (i32, i32) {
    %c0_i32 = arith.constant 0 : i32
    %c0_i32_0 = arith.constant 0 : i32
    %c0_i32_1 = arith.constant 0 : i32
    return %c0_i32, %c0_i32_0 : i32, i32
  }
}

</mosaic_0001>

<bundles_post_ra>
// kernel: tpu_custom_call.1
= control target key start
LH: loop header
LB: loop body
LE: loop exit
PB: predicated region body
PF: predicated region fallthrough
CT: control target
= control target key end

     0   :  { %6 = vsyncpa [#allocation3], 0  ;;  %s150_s0 = inlined_call_operand.hbm [shape: f32[16,128], index: 0, kind: input, shape index: {}]   ;;  %s151_s1 = inlined_call_operand.hbm [shape: f32[1,1], index: 1, kind: output, shape index: {}]  }
   0x1   :  { %7 = vsyncpa [#allocation4], 0  ;;  %s130_s6 = smov [#allocation2]  }
   0x2   :  { %s13_s7 = sshll.u32 %s130_s6, 4  ;;  %s14_s7 = int_to_ptr.vmem [resolvable:$true] %s13_s7 }
   0x3   :  { %s106_s8 = scalar_lea.vmem %s14_s7, 256  ;;  %p111_p1 = scmp.lt.s32.totalorder %s14_s7, %s14_s7 }
   0x4   :  { %p107_p0 = scmp.ne.s32.totalorder %s14_s7, %s106_s8  ;;  %p112_p2 = scmp.lt.s32.totalorder %s106_s8, %s106_s8 }
   0x6   :  { %p113_p3 = por %p112_p2, %p111_p1 }
   0x8   :  { %p114_p4 = pnand %p113_p3, %p107_p0 }
   0xa   :  { %117 = shalt.err (!%p114_p4)
}
   0xb   :  { %s131_s9 = smov 128   ;;  %s132_s10 = smov 8  }
   0xc   :  { %19 = dma.hbm_to_vmem [thread:$0]  %s150_s0, 256, %s14_s7, [#allocation3], %s131_s9, %s131_s9, %s132_s10  }
   0xd   :  { %126 = dma.done.wait [#allocation3], 256  }
   0xe   :  { %127 = vsyncadd [#allocation3], 4294967040  ;;  %v23_v0 = vld [vmem:[#allocation2] sm:$0xff]  ;;  %v24_v1 = vld [vmem:[#allocation2 + $0x8] sm:$0xff]  ;;  %s133_s14 = smov [#allocation5]  }
   0xf   :  { %v29_v2 = vand.u32 2147483647, %v23_v0  ;;  %v30_v3 = vand.u32 2147483647, %v24_v1  ;;  %v25_v15 = vmax.f32 %v23_v0, 0.0  ;;  %v26_v18 = vmax.f32 %v24_v1, 0.0 }
  0x11   :  { %v31_v4 = vsub.f32 0.0, %v29_v2  ;;  %v32_v5 = vsub.f32 0.0, %v30_v3  ;;  %v27_v22 = vsub.f32 %v25_v15, %v23_v0  ;;  %v28_v25 = vsub.f32 %v26_v18, %v24_v1 }
  0x13   :  { %v33_v6 = vmul.f32 1.442695, %v31_v4  ;;  %v35_v7 = vmul.f32 1.442695, %v32_v5 }
  0x15   :  { %90 = vpow2.f32 %v33_v6 }
  0x16   :  { %92 = vpow2.f32 %v35_v7 }
  0x22   :  { %v91_v8 = vpop.eup %90 }
  0x23   :  { %v93_v9 = vpop.eup %92  ;;  %v37_v10 = vadd.f32 1.0, %v91_v8  ;;  %v40_v12 = vmul.f32 -0.5, %v91_v8  ;;  %v43_v16 = vand.u32 2147483647, %v91_v8 }
  0x24   :  { %v46_v11 = vadd.f32 1.0, %v93_v9  ;;  %v49_v13 = vmul.f32 -0.5, %v93_v9  ;;  %v52_v19 = vand.u32 2147483647, %v93_v9 }
  0x25   :  { %94 = vlog2.f32 %v37_v10  ;;  %v41_v14 = vadd.f32 1.0, %v40_v12  ;;  %vm44_vm0 = vcmp.lt.f32.partialorder %v43_v16, 0.0004427343 }
  0x26   :  { %96 = vlog2.f32 %v46_v11  ;;  %v50_v17 = vadd.f32 1.0, %v49_v13  ;;  %vm53_vm1 = vcmp.lt.f32.partialorder %v52_v19, 0.0004427343 }
  0x27   :  { %v42_v20 = vmul.f32 %v91_v8, %v41_v14 }
  0x28   :  { %v51_v23 = vmul.f32 %v93_v9, %v50_v17 }
  0x32   :  { %v95_v21 = vpop.eup %94 }
  0x33   :  { %v97_v24 = vpop.eup %96  ;;  %v39_v26 = vmul.f32 0.6931472, %v95_v21 }
  0x34   :  { %v48_v27 = vmul.f32 0.6931472, %v97_v24 }
  0x35   :  { %v45_v28 = vsel %vm44_vm0, %v42_v20, %v39_v26 }
  0x36   :  { %v54_v29 = vsel %vm53_vm1, %v51_v23, %v48_v27  ;;  %v55_v30 = vadd.f32 %v45_v28, %v27_v22 }
  0x37   :  { %v56_v31 = vadd.f32 %v54_v29, %v28_v25 }
  0x39   :  { %v57_v32 = vadd.f32 %v56_v31, %v55_v30 }
  0x3b   :  { %58 = vadd.xlane.f32.xlu0 %v57_v32 }
  0xc4   :  { %v59_v33 = vpop.xlane.xlu0 %58 }
  0xc5   :  { %v60_v34 = vrot.slane %v59_v33, 4 }
  0xc7   :  { %v61_v35 = vadd.f32 %v60_v34, %v59_v33 }
  0xc9   :  { %v62_v36 = vrot.slane %v61_v35, 2 }
  0xcb   :  { %v63_v37 = vadd.f32 %v62_v36, %v61_v35 }
  0xcd   :  { %v64_v38 = vrot.slane %v63_v37, 1 }
  0xcf   :  { %v65_v39 = vadd.f32 %v64_v38, %v63_v37 }
  0xd1   :  { %84 = vpush %v65_v39 }
 0x102   :  { %s85_s0 = spop %84 }
 0x103   :  { %s67_s13 = smul.f32 0.00048828125, %s85_s0 }
 0x105   :  { %69 = sst [smem:[#allocation5]] %s67_s13 }
 0x106   :  { %77 = dma.smem_to_hbm %s133_s14, 16, %s151_s1, [#allocation4]  }
 0x107   :  { %128 = dma.done.wait [#allocation4], 16  }
 0x108   :  { %129 = vsyncadd [#allocation4], 4294967280 }
 0x109   :  { %81 = sfence }
 0x10a   :  { %82 = vsyncpa [#allocation3], 1 }
 0x10b   :  { %83 = vsyncpa [#allocation4], 1 }

</bundles_post_ra>
